<compile_context>
chip_gen: v5e
topology: v5e:2x2
jax: 0.10.0
libtpu: 0.0.40
codegen_flags: <defaults>
</compile_context>

<pallas_src>
import math

import jax
import jax.numpy as jnp
import numpy as np
from jax import lax
from jax.experimental import pallas as pl
from jax.experimental.pallas import tpu as pltpu

# ---- small, module-consistent config ----
DIM = 32                           # args.dim
N_HEADS = 4                        # args.n_heads
N_KV_HEADS = 2                     # args.n_kv_heads
HEAD_DIM = DIM // N_HEADS          # 8
N_REP = N_HEADS // N_KV_HEADS      # 2
SEQ = 8
BATCH = 2
SCALE = 1.0 / math.sqrt(HEAD_DIM)

BS = BATCH * SEQ                   # 16 rows of x
BHS = BATCH * N_HEADS * SEQ        # 64 head-stacked rows
LANES = 128                        # lane-dense width for weights / output

LOG_S = SEQ.bit_length() - 1             # 3
LOG_HD = HEAD_DIM.bit_length() - 1       # 3
LOG_HS = (N_HEADS * SEQ).bit_length() - 1  # 5


def attention_kernel(x_ref, c_ref, o_ref):
    f32 = jnp.float32
    i32 = jnp.int32

    x = x_ref[...]                                   # (BS, DIM)

    # Static, sublane-aligned views into the consolidated constant slab.
    wqkv = c_ref[0:32, :]                            # (DIM, 128)  [wq*scale | wk_rep | wv_rep | 0]
    wqkvp = c_ref[32:64, :]                          # (DIM, 128)  [wq*scale@P | wk_rep@P | 0 | 0]
    cosf = c_ref[64:80, :]                           # (BS, 128)   [cos | cos | 1 (v) | 0]
    sinf = c_ref[80:96, :]                           # (BS, 128)   [sin | sin | 0     | 0]
    wo = c_ref[96:128, :]                            # (DIM, 128)  [wo | 0]

    # Fused QKV projection + pair-swapped copy: two independent MXU ops off x.
    qkv = jnp.dot(x, wqkv, preferred_element_type=f32)    # (BS, 128)
    qkvp = jnp.dot(x, wqkvp, preferred_element_type=f32)  # (BS, 128)
    # Interleaved RoPE over the whole slab (V block passes through: cos=1, sin=0).
    roped = qkv * cosf + qkvp * sinf                        # (BS, 128): [q|k|v|0]

    # ---- head-stacking operators, generated in-kernel (no DMA, VPU filler) ----
    # Erep: (BHS, BS) row-replication, stacked row r = (b*H + h)*S + s  <-  x row b*S + s
    r_bs = lax.broadcasted_iota(i32, (BHS, BS), 0)
    c_bs = lax.broadcasted_iota(i32, (BHS, BS), 1)
    src_row = ((r_bs >> LOG_HS) << LOG_S) | (r_bs & (SEQ - 1))
    erep = jnp.where(src_row == c_bs, 1.0, 0.0)

    wide = jnp.dot(erep, roped, preferred_element_type=f32)   # (BHS, 128)

    # Msel: keep only this row's head columns (in each of the q/k/v 32-lane groups).
    r_l = lax.broadcasted_iota(i32, (BHS, LANES), 0)
    c_l = lax.broadcasted_iota(i32, (BHS, LANES), 1)
    head_r = (r_l >> LOG_S) & (N_HEADS - 1)
    keep = (c_l < 3 * DIM) & (((c_l & (DIM - 1)) >> LOG_HD) == head_r)
    maskwide = wide * jnp.where(keep, 1.0, 0.0)

    # Tsel_{q,k,v}: (128, hd) collapse of the selected head columns onto hd lanes.
    c_t = lax.broadcasted_iota(i32, (LANES, HEAD_DIM), 0)
    d_t = lax.broadcasted_iota(i32, (LANES, HEAD_DIM), 1)
    base = (c_t & (HEAD_DIM - 1)) == d_t
    tq = jnp.where(base & (c_t < DIM), 1.0, 0.0)
    tk = jnp.where(base & (c_t >= DIM) & (c_t < 2 * DIM), 1.0, 0.0)
    tv = jnp.where(base & (c_t >= 2 * DIM) & (c_t < 3 * DIM), 1.0, 0.0)

    qs = jnp.dot(maskwide, tq, preferred_element_type=f32)    # (BHS, hd)  (scale folded into wq)
    ks = jnp.dot(maskwide, tk, preferred_element_type=f32)
    vs = jnp.dot(maskwide, tv, preferred_element_type=f32)

    # One block-diagonal score matmul for all (batch, head) blocks.
    s = lax.dot_general(qs, ks, (((1,), (1,)), ((), ())),
                        preferred_element_type=f32)           # (BHS, BHS)

    # Causal + same-batch + same-head mask, generated in-kernel (finite -1e30, no NaN risk).
    r_s = lax.broadcasted_iota(i32, (BHS, BHS), 0)
    c_s = lax.broadcasted_iota(i32, (BHS, BHS), 1)
    allow = ((r_s >> LOG_S) == (c_s >> LOG_S)) & (r_s >= c_s)
    s = jnp.where(allow, s, -1e30)

    m = jnp.max(s, axis=-1, keepdims=True)
    p = jnp.exp(s - m)
    denom = jnp.sum(p, axis=-1, keepdims=True)
    o = jnp.dot(p, vs, preferred_element_type=f32)            # (BHS, hd)
    inv = pl.reciprocal(denom, approx=True)                   # EUP slot
    inv = inv * (2.0 - denom * inv)                           # one Newton step for tolerance
    o = o * inv                                               # deferred softmax normalization

    # ---- un-stack heads: broadcast to head column groups, mask, collapse over heads ----
    d_u = lax.broadcasted_iota(i32, (HEAD_DIM, DIM), 0)
    c_u = lax.broadcasted_iota(i32, (HEAD_DIM, DIM), 1)
    tsel_dt = jnp.where((c_u & (HEAD_DIM - 1)) == d_u, 1.0, 0.0)    # (hd, DIM)
    wide_o = jnp.dot(o, tsel_dt, preferred_element_type=f32)        # (BHS, DIM)

    r_o = lax.broadcasted_iota(i32, (BHS, DIM), 0)
    c_o = lax.broadcasted_iota(i32, (BHS, DIM), 1)
    omask = jnp.where((c_o >> LOG_HD) == ((r_o >> LOG_S) & (N_HEADS - 1)), 1.0, 0.0)
    wide_o = wide_o * omask

    # ErepT generated directly (plain matmul; avoids transposed-LHS dot_general).
    r_t = lax.broadcasted_iota(i32, (BS, BHS), 0)
    c_t2 = lax.broadcasted_iota(i32, (BS, BHS), 1)
    src_t = ((c_t2 >> LOG_HS) << LOG_S) | (c_t2 & (SEQ - 1))
    erept = jnp.where(src_t == r_t, 1.0, 0.0)                       # (BS, BHS)

    attn = jnp.dot(erept, wide_o, preferred_element_type=f32)       # (BS, DIM)

    # Output projection against zero-padded wo -> lane-dense (BS, 128) store.
    o_ref[...] = jnp.dot(attn, wo, preferred_element_type=f32)


def _static_weight_tables():
    """GQA replication and signed pair-swap permutation (numpy, trace-time)."""
    D, H, Hkv, hd = DIM, N_HEADS, N_KV_HEADS, HEAD_DIM
    nrep = H // Hkv
    # GQA replication folded into k/v weights: (Hkv*hd, H*hd)
    R = np.zeros((Hkv * hd, D), np.float32)
    for h in range(H):
        g = h // nrep
        R[g * hd:(g + 1) * hd, h * hd:(h + 1) * hd] = np.eye(hd, dtype=np.float32)
    # Pair-swap permutation with the (-,+,-,+,...) sign folded into its columns.
    idx = np.arange(D)
    Pswap = np.zeros((D, D), np.float32)
    Pswap[idx ^ 1, idx] = 1.0
    sign = np.tile(np.array([-1.0, 1.0], np.float32), D // 2)
    P_signed = Pswap * sign[None, :]
    return R, P_signed


@jax.jit
def attention_forward(x, wq, wk, wv, wo, freqs_cos, freqs_sin):
    B, S, D = x.shape
    H = N_HEADS

    R, P_signed = _static_weight_tables()
    Rj = jnp.asarray(R)
    Pj = jnp.asarray(P_signed)

    x2 = x.reshape(B * S, D)

    # Fold scale into wq; fold GQA replication into wk/wv; fold pair-swap P into both.
    wq_s = wq * SCALE
    wk_rep = wk @ Rj
    wv_rep = wv @ Rj
    z_dd = jnp.zeros((D, D), jnp.float32)
    wqkv = jnp.concatenate([wq_s, wk_rep, wv_rep, z_dd], axis=1)            # (D, 128)
    wqkvp = jnp.concatenate([wq_s @ Pj, wk_rep @ Pj, z_dd, z_dd], axis=1)   # (D, 128)

    # RoPE tables expanded to (B*S, 128): element-repeat over pairs, tiled across
    # heads/batch; V block: cos=1, sin=0; pad block: 0.
    cos_d = jnp.tile(jnp.repeat(freqs_cos, 2, axis=-1), (B, H))             # (B*S, D)
    sin_d = jnp.tile(jnp.repeat(freqs_sin, 2, axis=-1), (B, H))
    ones_bd = jnp.ones((B * S, D), jnp.float32)
    zeros_bd = jnp.zeros((B * S, D), jnp.float32)
    cos128 = jnp.concatenate([cos_d, cos_d, ones_bd, zeros_bd], axis=1)     # (B*S, 128)
    sin128 = jnp.concatenate([sin_d, sin_d, zeros_bd, zeros_bd], axis=1)

    wo_pad = jnp.concatenate([wo, jnp.zeros((D, LANES - D), jnp.float32)], axis=1)  # (D, 128)

    # One lane-dense constant slab: rows [0:32) Wqkv | [32:64) Wqkv@P | [64:80) cos
    # | [80:96) sin | [96:128) wo_pad   ->  a single unmasked DMA.
    const = jnp.concatenate([wqkv, wqkvp, cos128, sin128, wo_pad], axis=0)  # (128, 128)

    out = pl.pallas_call(
        attention_kernel,
        out_shape=jax.ShapeDtypeStruct((B * S, LANES), jnp.float32),
        grid=(1,),
        in_specs=[
            pl.BlockSpec((B * S, D), lambda i: (0, 0)),
            pl.BlockSpec((LANES, LANES), lambda i: (0, 0)),
        ],
        out_specs=pl.BlockSpec((B * S, LANES), lambda i: (0, 0)),
        compiler_params=pltpu.CompilerParams(dimension_semantics=("arbitrary",)),
    )(x2, const)

    # Lane-dense store inside the kernel; cheap slice back to dim outside.
    return out[:, :D].reshape(B, S, D)


# ---------- pure-JAX reference (mirrors the PyTorch forward) ----------
def reference_forward(x, wq, wk, wv, wo, freqs_cos, freqs_sin):
    B, S, D = x.shape
    hd = HEAD_DIM
    q = (x @ wq).reshape(B, S, N_HEADS, hd)
    k = (x @ wk).reshape(B, S, N_KV_HEADS, hd)
    v = (x @ wv).reshape(B, S, N_KV_HEADS, hd)

    def rope(t):
        tr, ti = t[..., 0::2], t[..., 1::2]
        c = freqs_cos[None, :, None, :]
        s = freqs_sin[None, :, None, :]
        o_r = tr * c - ti * s
        o_i = tr * s + ti * c
        return jnp.stack([o_r, o_i], axis=-1).reshape(t.shape)

    q, k = rope(q), rope(k)
    k = jnp.repeat(k, N_REP, axis=2)
    v = jnp.repeat(v, N_REP, axis=2)
    q = q.transpose(0, 2, 1, 3)
    k = k.transpose(0, 2, 1, 3)
    v = v.transpose(0, 2, 1, 3)
    scores = (q @ k.swapaxes(-1, -2)) / math.sqrt(hd)
    mask = np.triu(np.full((S, S), -np.inf, np.float32), k=1)
    scores = scores + mask[None, None]
    p = jax.nn.softmax(scores, axis=-1)
    out = p @ v
    out = out.transpose(0, 2, 1, 3).reshape(B, S, N_HEADS * hd)
    return out @ wo


if __name__ == "__main__":
    key = jax.random.PRNGKey(0)
    kx, kq, kk, kv, ko = jax.random.split(key, 5)

    x = jax.random.normal(kx, (BATCH, SEQ, DIM), jnp.float32)
    scale = 1.0 / math.sqrt(DIM)
    wq = jax.random.normal(kq, (DIM, N_HEADS * HEAD_DIM), jnp.float32) * scale
    wk = jax.random.normal(kk, (DIM, N_KV_HEADS * HEAD_DIM), jnp.float32) * scale
    wv = jax.random.normal(kv, (DIM, N_KV_HEADS * HEAD_DIM), jnp.float32) * scale
    wo = jax.random.normal(ko, (N_HEADS * HEAD_DIM, DIM), jnp.float32) * scale

    # precompute_freqs_cis-style tables: (seq, head_dim // 2)
    inv_freq = 1.0 / (10000.0 ** (np.arange(0, HEAD_DIM, 2, dtype=np.float32) / HEAD_DIM))
    t = np.arange(SEQ, dtype=np.float32)
    ang = np.outer(t, inv_freq)
    freqs_cos = jnp.asarray(np.cos(ang), jnp.float32)
    freqs_sin = jnp.asarray(np.sin(ang), jnp.float32)

    out = attention_forward(x, wq, wk, wv, wo, freqs_cos, freqs_sin)
    out = jax.block_until_ready(out)

    ref = reference_forward(x, wq, wk, wv, wo, freqs_cos, freqs_sin)
    np.testing.assert_allclose(np.asarray(out), np.asarray(ref), rtol=1e-4, atol=1e-4)

    print("KERNEL_OK")
</pallas_src>

<mosaic_0001>
module attributes {stable_mosaic.version = 11 : i64} {
  func.func @attention_kernel(%arg0: i32, %arg1: memref<16x32xf32, #tpu.memory_space<vmem>>, %arg2: memref<128x128xf32, #tpu.memory_space<vmem>>, %arg3: memref<16x128xf32, #tpu.memory_space<vmem>>) attributes {dimension_semantics = [#tpu.dimension_semantics<arbitrary>], iteration_bounds = array<i64: 1>, scalar_prefetch = 0 : i64, scratch_operands = 0 : i64, tpu.core_type = #tpu.core_type<tc>, window_params = [{pipeline_mode = #tpu.pipeline_mode<synchronous>, transform_indices = @transform_0, window_bounds = array<i64: 16, 32>}, {pipeline_mode = #tpu.pipeline_mode<synchronous>, transform_indices = @transform_1, window_bounds = array<i64: 128, 128>}, {pipeline_mode = #tpu.pipeline_mode<synchronous>, transform_indices = @transform_2, window_bounds = array<i64: 16, 128>}]} {
    %c0 = arith.constant 0 : index
    %c0_0 = arith.constant 0 : index
    %0 = vector.load %arg1[%c0, %c0_0] : memref<16x32xf32, #tpu.memory_space<vmem>>, vector<16x32xf32>
    %c0_1 = arith.constant 0 : index
    %c0_2 = arith.constant 0 : index
    %1 = vector.load %arg2[%c0_1, %c0_2] : memref<128x128xf32, #tpu.memory_space<vmem>>, vector<32x128xf32>
    %c32 = arith.constant 32 : index
    %c0_3 = arith.constant 0 : index
    %2 = vector.load %arg2[%c32, %c0_3] : memref<128x128xf32, #tpu.memory_space<vmem>>, vector<32x128xf32>
    %c64 = arith.constant 64 : index
    %c0_4 = arith.constant 0 : index
    %3 = vector.load %arg2[%c64, %c0_4] : memref<128x128xf32, #tpu.memory_space<vmem>>, vector<16x128xf32>
    %c80 = arith.constant 80 : index
    %c0_5 = arith.constant 0 : index
    %4 = vector.load %arg2[%c80, %c0_5] : memref<128x128xf32, #tpu.memory_space<vmem>>, vector<16x128xf32>
    %c96 = arith.constant 96 : index
    %c0_6 = arith.constant 0 : index
    %5 = vector.load %arg2[%c96, %c0_6] : memref<128x128xf32, #tpu.memory_space<vmem>>, vector<32x128xf32>
    %cst = arith.constant dense<0.000000e+00> : vector<16x128xf32>
    %6 = tpu.matmul %0, %1, %cst {dimension_numbers = #tpu.dot_dimension_numbers<[1], [0], [0], [1], [0, 0, 1, 1], [], []>} : vector<16x32xf32>, vector<32x128xf32>, vector<16x128xf32> -> vector<16x128xf32>
    %cst_7 = arith.constant dense<0.000000e+00> : vector<16x128xf32>
    %7 = tpu.matmul %0, %2, %cst_7 {dimension_numbers = #tpu.dot_dimension_numbers<[1], [0], [0], [1], [0, 0, 1, 1], [], []>} : vector<16x32xf32>, vector<32x128xf32>, vector<16x128xf32> -> vector<16x128xf32>
    %8 = arith.mulf %6, %3 : vector<16x128xf32>
    %9 = arith.mulf %7, %4 : vector<16x128xf32>
    %10 = arith.addf %8, %9 : vector<16x128xf32>
    %11 = tpu.iota {dimensions = array<i32: 0>} : vector<64x16xi32>
    %12 = tpu.iota {dimensions = array<i32: 1>} : vector<64x16xi32>
    %c5_i32 = arith.constant 5 : i32
    %13 = vector.broadcast %c5_i32 : i32 to vector<64x16xi32>
    %14 = arith.shrsi %11, %13 : vector<64x16xi32>
    %c3_i32 = arith.constant 3 : i32
    %15 = vector.broadcast %c3_i32 : i32 to vector<64x16xi32>
    %16 = arith.shli %14, %15 : vector<64x16xi32>
    %c7_i32 = arith.constant 7 : i32
    %17 = vector.broadcast %c7_i32 : i32 to vector<64x16xi32>
    %18 = arith.andi %11, %17 : vector<64x16xi32>
    %19 = arith.ori %16, %18 : vector<64x16xi32>
    %20 = arith.cmpi eq, %19, %12 : vector<64x16xi32>
    %cst_8 = arith.constant 1.000000e+00 : f32
    %cst_9 = arith.constant 0.000000e+00 : f32
    %21 = vector.broadcast %cst_8 : f32 to vector<64x16xf32>
    %22 = vector.broadcast %cst_9 : f32 to vector<64x16xf32>
    %23 = arith.select %20, %21, %22 : vector<64x16xi1>, vector<64x16xf32>
    %cst_10 = arith.constant dense<0.000000e+00> : vector<64x128xf32>
    %24 = tpu.matmul %23, %10, %cst_10 {dimension_numbers = #tpu.dot_dimension_numbers<[1], [0], [0], [1], [0, 0, 1, 1], [], []>} : vector<64x16xf32>, vector<16x128xf32>, vector<64x128xf32> -> vector<64x128xf32>
    %25 = tpu.iota {dimensions = array<i32: 0>} : vector<64x128xi32>
    %26 = tpu.iota {dimensions = array<i32: 1>} : vector<64x128xi32>
    %c3_i32_11 = arith.constant 3 : i32
    %27 = vector.broadcast %c3_i32_11 : i32 to vector<64x128xi32>
    %28 = arith.shrsi %25, %27 : vector<64x128xi32>
    %c3_i32_12 = arith.constant 3 : i32
    %29 = vector.broadcast %c3_i32_12 : i32 to vector<64x128xi32>
    %30 = arith.andi %28, %29 : vector<64x128xi32>
    %c96_i32 = arith.constant 96 : i32
    %31 = vector.broadcast %c96_i32 : i32 to vector<64x128xi32>
    %32 = arith.cmpi slt, %26, %31 : vector<64x128xi32>
    %c31_i32 = arith.constant 31 : i32
    %33 = vector.broadcast %c31_i32 : i32 to vector<64x128xi32>
    %34 = arith.andi %26, %33 : vector<64x128xi32>
    %c3_i32_13 = arith.constant 3 : i32
    %35 = vector.broadcast %c3_i32_13 : i32 to vector<64x128xi32>
    %36 = arith.shrsi %34, %35 : vector<64x128xi32>
    %37 = arith.cmpi eq, %36, %30 : vector<64x128xi32>
    %38 = arith.andi %32, %37 : vector<64x128xi1>
    %cst_14 = arith.constant 1.000000e+00 : f32
    %cst_15 = arith.constant 0.000000e+00 : f32
    %39 = vector.broadcast %cst_14 : f32 to vector<64x128xf32>
    %40 = vector.broadcast %cst_15 : f32 to vector<64x128xf32>
    %41 = arith.select %38, %39, %40 : vector<64x128xi1>, vector<64x128xf32>
    %42 = arith.mulf %24, %41 : vector<64x128xf32>
    %43 = tpu.iota {dimensions = array<i32: 0>} : vector<128x8xi32>
    %44 = tpu.iota {dimensions = array<i32: 1>} : vector<128x8xi32>
    %c7_i32_16 = arith.constant 7 : i32
    %45 = vector.broadcast %c7_i32_16 : i32 to vector<128x8xi32>
    %46 = arith.andi %43, %45 : vector<128x8xi32>
    %47 = arith.cmpi eq, %46, %44 : vector<128x8xi32>
    %c32_i32 = arith.constant 32 : i32
    %48 = vector.broadcast %c32_i32 : i32 to vector<128x8xi32>
    %49 = arith.cmpi slt, %43, %48 : vector<128x8xi32>
    %50 = arith.andi %47, %49 : vector<128x8xi1>
    %cst_17 = arith.constant 1.000000e+00 : f32
    %cst_18 = arith.constant 0.000000e+00 : f32
    %51 = vector.broadcast %cst_17 : f32 to vector<128x8xf32>
    %52 = vector.broadcast %cst_18 : f32 to vector<128x8xf32>
    %53 = arith.select %50, %51, %52 : vector<128x8xi1>, vector<128x8xf32>
    %c32_i32_19 = arith.constant 32 : i32
    %54 = vector.broadcast %c32_i32_19 : i32 to vector<128x8xi32>
    %55 = arith.cmpi sge, %43, %54 : vector<128x8xi32>
    %56 = arith.andi %47, %55 : vector<128x8xi1>
    %c64_i32 = arith.constant 64 : i32
    %57 = vector.broadcast %c64_i32 : i32 to vector<128x8xi32>
    %58 = arith.cmpi slt, %43, %57 : vector<128x8xi32>
    %59 = arith.andi %56, %58 : vector<128x8xi1>
    %cst_20 = arith.constant 1.000000e+00 : f32
    %cst_21 = arith.constant 0.000000e+00 : f32
    %60 = vector.broadcast %cst_20 : f32 to vector<128x8xf32>
    %61 = vector.broadcast %cst_21 : f32 to vector<128x8xf32>
    %62 = arith.select %59, %60, %61 : vector<128x8xi1>, vector<128x8xf32>
    %c64_i32_22 = arith.constant 64 : i32
    %63 = vector.broadcast %c64_i32_22 : i32 to vector<128x8xi32>
    %64 = arith.cmpi sge, %43, %63 : vector<128x8xi32>
    %65 = arith.andi %47, %64 : vector<128x8xi1>
    %c96_i32_23 = arith.constant 96 : i32
    %66 = vector.broadcast %c96_i32_23 : i32 to vector<128x8xi32>
    %67 = arith.cmpi slt, %43, %66 : vector<128x8xi32>
    %68 = arith.andi %65, %67 : vector<128x8xi1>
    %cst_24 = arith.constant 1.000000e+00 : f32
    %cst_25 = arith.constant 0.000000e+00 : f32
    %69 = vector.broadcast %cst_24 : f32 to vector<128x8xf32>
    %70 = vector.broadcast %cst_25 : f32 to vector<128x8xf32>
    %71 = arith.select %68, %69, %70 : vector<128x8xi1>, vector<128x8xf32>
    %cst_26 = arith.constant dense<0.000000e+00> : vector<64x8xf32>
    %72 = tpu.matmul %42, %53, %cst_26 {dimension_numbers = #tpu.dot_dimension_numbers<[1], [0], [0], [1], [0, 0, 1, 1], [], []>} : vector<64x128xf32>, vector<128x8xf32>, vector<64x8xf32> -> vector<64x8xf32>
    %cst_27 = arith.constant dense<0.000000e+00> : vector<64x8xf32>
    %73 = tpu.matmul %42, %62, %cst_27 {dimension_numbers = #tpu.dot_dimension_numbers<[1], [0], [0], [1], [0, 0, 1, 1], [], []>} : vector<64x128xf32>, vector<128x8xf32>, vector<64x8xf32> -> vector<64x8xf32>
    %cst_28 = arith.constant dense<0.000000e+00> : vector<64x8xf32>
    %74 = tpu.matmul %42, %71, %cst_28 {dimension_numbers = #tpu.dot_dimension_numbers<[1], [0], [0], [1], [0, 0, 1, 1], [], []>} : vector<64x128xf32>, vector<128x8xf32>, vector<64x8xf32> -> vector<64x8xf32>
    %cst_29 = arith.constant dense<0.000000e+00> : vector<64x64xf32>
    %75 = tpu.matmul %72, %73, %cst_29 {dimension_numbers = #tpu.dot_dimension_numbers<[1], [1], [0], [0], [0, 0, 1, 0], [], []>} : vector<64x8xf32>, vector<64x8xf32>, vector<64x64xf32> -> vector<64x64xf32>
    %76 = tpu.iota {dimensions = array<i32: 0>} : vector<64x64xi32>
    %77 = tpu.iota {dimensions = array<i32: 1>} : vector<64x64xi32>
    %c3_i32_30 = arith.constant 3 : i32
    %78 = vector.broadcast %c3_i32_30 : i32 to vector<64x64xi32>
    %79 = arith.shrsi %76, %78 : vector<64x64xi32>
    %c3_i32_31 = arith.constant 3 : i32
    %80 = vector.broadcast %c3_i32_31 : i32 to vector<64x64xi32>
    %81 = arith.shrsi %77, %80 : vector<64x64xi32>
    %82 = arith.cmpi eq, %79, %81 : vector<64x64xi32>
    %83 = arith.cmpi sge, %76, %77 : vector<64x64xi32>
    %84 = arith.andi %82, %83 : vector<64x64xi1>
    %cst_32 = arith.constant -1.000000e+30 : f32
    %85 = vector.broadcast %cst_32 : f32 to vector<64x64xf32>
    %86 = arith.select %84, %75, %85 : vector<64x64xi1>, vector<64x64xf32>
    %cst_33 = arith.constant dense<0xFF800000> : vector<64xf32>
    %87 = vector.multi_reduction <maximumf>, %86, %cst_33 [1] : vector<64x64xf32> to vector<64xf32>
    %88 = vector.shape_cast %87 : vector<64xf32> to vector<64x1xf32>
    %89 = vector.broadcast %88 : vector<64x1xf32> to vector<64x64xf32>
    %90 = arith.subf %86, %89 : vector<64x64xf32>
    %91 = math.exp %90 : vector<64x64xf32>
    %cst_34 = arith.constant dense<0.000000e+00> : vector<64xf32>
    %92 = vector.multi_reduction <add>, %91, %cst_34 [1] : vector<64x64xf32> to vector<64xf32>
    %93 = vector.shape_cast %92 : vector<64xf32> to vector<64x1xf32>
    %cst_35 = arith.constant dense<0.000000e+00> : vector<64x8xf32>
    %94 = tpu.matmul %91, %74, %cst_35 {dimension_numbers = #tpu.dot_dimension_numbers<[1], [0], [0], [1], [0, 0, 1, 1], [], []>} : vector<64x64xf32>, vector<64x8xf32>, vector<64x8xf32> -> vector<64x8xf32>
    %95 = tpu.reciprocal %93 {approx = true} : vector<64x1xf32> -> vector<64x1xf32>
    %96 = arith.mulf %93, %95 : vector<64x1xf32>
    %cst_36 = arith.constant 2.000000e+00 : f32
    %97 = vector.broadcast %cst_36 : f32 to vector<64x1xf32>
    %98 = arith.subf %97, %96 : vector<64x1xf32>
    %99 = arith.mulf %95, %98 : vector<64x1xf32>
    %100 = vector.broadcast %99 : vector<64x1xf32> to vector<64x8xf32>
    %101 = arith.mulf %94, %100 : vector<64x8xf32>
    %102 = tpu.iota {dimensions = array<i32: 0>} : vector<8x32xi32>
    %103 = tpu.iota {dimensions = array<i32: 1>} : vector<8x32xi32>
    %c7_i32_37 = arith.constant 7 : i32
    %104 = vector.broadcast %c7_i32_37 : i32 to vector<8x32xi32>
    %105 = arith.andi %103, %104 : vector<8x32xi32>
    %106 = arith.cmpi eq, %105, %102 : vector<8x32xi32>
    %cst_38 = arith.constant 1.000000e+00 : f32
    %cst_39 = arith.constant 0.000000e+00 : f32
    %107 = vector.broadcast %cst_38 : f32 to vector<8x32xf32>
    %108 = vector.broadcast %cst_39 : f32 to vector<8x32xf32>
    %109 = arith.select %106, %107, %108 : vector<8x32xi1>, vector<8x32xf32>
    %cst_40 = arith.constant dense<0.000000e+00> : vector<64x32xf32>
    %110 = tpu.matmul %101, %109, %cst_40 {dimension_numbers = #tpu.dot_dimension_numbers<[1], [0], [0], [1], [0, 0, 1, 1], [], []>} : vector<64x8xf32>, vector<8x32xf32>, vector<64x32xf32> -> vector<64x32xf32>
    %111 = tpu.iota {dimensions = array<i32: 0>} : vector<64x32xi32>
    %112 = tpu.iota {dimensions = array<i32: 1>} : vector<64x32xi32>
    %c3_i32_41 = arith.constant 3 : i32
    %113 = vector.broadcast %c3_i32_41 : i32 to vector<64x32xi32>
    %114 = arith.shrsi %112, %113 : vector<64x32xi32>
    %c3_i32_42 = arith.constant 3 : i32
    %115 = vector.broadcast %c3_i32_42 : i32 to vector<64x32xi32>
    %116 = arith.shrsi %111, %115 : vector<64x32xi32>
    %c3_i32_43 = arith.constant 3 : i32
    %117 = vector.broadcast %c3_i32_43 : i32 to vector<64x32xi32>
    %118 = arith.andi %116, %117 : vector<64x32xi32>
    %119 = arith.cmpi eq, %114, %118 : vector<64x32xi32>
    %cst_44 = arith.constant 1.000000e+00 : f32
    %cst_45 = arith.constant 0.000000e+00 : f32
    %120 = vector.broadcast %cst_44 : f32 to vector<64x32xf32>
    %121 = vector.broadcast %cst_45 : f32 to vector<64x32xf32>
    %122 = arith.select %119, %120, %121 : vector<64x32xi1>, vector<64x32xf32>
    %123 = arith.mulf %110, %122 : vector<64x32xf32>
    %124 = tpu.iota {dimensions = array<i32: 0>} : vector<16x64xi32>
    %125 = tpu.iota {dimensions = array<i32: 1>} : vector<16x64xi32>
    %c5_i32_46 = arith.constant 5 : i32
    %126 = vector.broadcast %c5_i32_46 : i32 to vector<16x64xi32>
    %127 = arith.shrsi %125, %126 : vector<16x64xi32>
    %c3_i32_47 = arith.constant 3 : i32
    %128 = vector.broadcast %c3_i32_47 : i32 to vector<16x64xi32>
    %129 = arith.shli %127, %128 : vector<16x64xi32>
    %c7_i32_48 = arith.constant 7 : i32
    %130 = vector.broadcast %c7_i32_48 : i32 to vector<16x64xi32>
    %131 = arith.andi %125, %130 : vector<16x64xi32>
    %132 = arith.ori %129, %131 : vector<16x64xi32>
    %133 = arith.cmpi eq, %132, %124 : vector<16x64xi32>
    %cst_49 = arith.constant 1.000000e+00 : f32
    %cst_50 = arith.constant 0.000000e+00 : f32
    %134 = vector.broadcast %cst_49 : f32 to vector<16x64xf32>
    %135 = vector.broadcast %cst_50 : f32 to vector<16x64xf32>
    %136 = arith.select %133, %134, %135 : vector<16x64xi1>, vector<16x64xf32>
    %cst_51 = arith.constant dense<0.000000e+00> : vector<16x32xf32>
    %137 = tpu.matmul %136, %123, %cst_51 {dimension_numbers = #tpu.dot_dimension_numbers<[1], [0], [0], [1], [0, 0, 1, 1], [], []>} : vector<16x64xf32>, vector<64x32xf32>, vector<16x32xf32> -> vector<16x32xf32>
    %cst_52 = arith.constant dense<0.000000e+00> : vector<16x128xf32>
    %138 = tpu.matmul %137, %5, %cst_52 {dimension_numbers = #tpu.dot_dimension_numbers<[1], [0], [0], [1], [0, 0, 1, 1], [], []>} : vector<16x32xf32>, vector<32x128xf32>, vector<16x128xf32> -> vector<16x128xf32>
    %c0_53 = arith.constant 0 : index
    %c0_54 = arith.constant 0 : index
    %139 = vector.load %arg3[%c0_53, %c0_54] : memref<16x128xf32, #tpu.memory_space<vmem>>, vector<16x128xf32>
    tpu.vector_store %arg3[%c0_53, %c0_54], %138 {strides = array<i32>} : memref<16x128xf32, #tpu.memory_space<vmem>>, vector<16x128xf32>,
    return
  }
  func.func @transform_0(%arg0: i32) -> (i32, i32) {
    %c0_i32 = arith.constant 0 : i32
    %c0_i32_0 = arith.constant 0 : i32
    %c0_i32_1 = arith.constant 0 : i32
    return %c0_i32, %c0_i32_0 : i32, i32
  }
  func.func @transform_1(%arg0: i32) -> (i32, i32) {
    %c0_i32 = arith.constant 0 : i32
    %c0_i32_0 = arith.constant 0 : i32
    %c0_i32_1 = arith.constant 0 : i32
    return %c0_i32, %c0_i32_0 : i32, i32
  }
  func.func @transform_2(%arg0: i32) -> (i32, i32) {
    %c0_i32 = arith.constant 0 : i32
    %c0_i32_0 = arith.constant 0 : i32
    %c0_i32_1 = arith.constant 0 : i32
    return %c0_i32, %c0_i32_0 : i32, i32
  }
}

</mosaic_0001>

<bundles_post_ra>
// kernel: tile.10
= control target key start
LH: loop header
LB: loop body
LE: loop exit
PB: predicated region body
PF: predicated region fallthrough
CT: control target
= control target key end

     0   :  { %s154_s0 = inlined_call_operand.vmem [shape: f32[8,8], index: 0, kind: input, shape index: {}]   ;;  %s155_s1 = inlined_call_operand.vmem [shape: f32[2,8,4,8], index: 1, kind: output, shape index: {}]  }
   0x1   :  { %v4_v0 = vld [vmem:[%s154_s0] ss:$0 sm:$0xff]  ;;  %v51_v1 = vld [vmem:[%s154_s0 + $0x1] ss:$0 sm:$0xff]  ;;  %v54_v2 = vld [vmem:[%s154_s0 + $0x2] ss:$0 sm:$0xff] }
   0x2   :  { %5 = vst [vmem:[%s155_s1] sm:$0xf] %v4_v0  ;;  %v57_v3 = vld [vmem:[%s154_s0 + $0x3] ss:$0 sm:$0xff]  ;;  %v60_v4 = vld [vmem:[%s154_s0 + $0x4] ss:$0 sm:$0xff] }
   0x3   :  { %50 = vst [vmem:[%s155_s1 + $0x20] sm:$0xf] %v4_v0  ;;  %v63_v5 = vld [vmem:[%s154_s0 + $0x5] ss:$0 sm:$0xff]  ;;  %v66_v6 = vld [vmem:[%s154_s0 + $0x6] ss:$0 sm:$0xff] }
   0x4   :  { %52 = vst [vmem:[%s155_s1 + $0x4] sm:$0xf] %v51_v1  ;;  %v69_v7 = vld [vmem:[%s154_s0 + $0x7] ss:$0 sm:$0xff] }
   0x5   :  { %53 = vst [vmem:[%s155_s1 + $0x24] sm:$0xf] %v51_v1 }
   0x6   :  { %55 = vst [vmem:[%s155_s1 + $0x8] sm:$0xf] %v54_v2 }
   0x7   :  { %56 = vst [vmem:[%s155_s1 + $0x28] sm:$0xf] %v54_v2 }
   0x8   :  { %58 = vst [vmem:[%s155_s1 + $0xc] sm:$0xf] %v57_v3 }
   0x9   :  { %59 = vst [vmem:[%s155_s1 + $0x2c] sm:$0xf] %v57_v3 }
   0xa   :  { %61 = vst [vmem:[%s155_s1 + $0x10] sm:$0xf] %v60_v4 }
   0xb   :  { %62 = vst [vmem:[%s155_s1 + $0x30] sm:$0xf] %v60_v4 }
   0xc   :  { %64 = vst [vmem:[%s155_s1 + $0x14] sm:$0xf] %v63_v5 }
   0xd   :  { %65 = vst [vmem:[%s155_s1 + $0x34] sm:$0xf] %v63_v5 }
   0xe   :  { %67 = vst [vmem:[%s155_s1 + $0x18] sm:$0xf] %v66_v6 }
   0xf   :  { %68 = vst [vmem:[%s155_s1 + $0x38] sm:$0xf] %v66_v6 }
  0x10   :  { %70 = vst [vmem:[%s155_s1 + $0x1c] sm:$0xf] %v69_v7 }
  0x11   :  { %71 = vst [vmem:[%s155_s1 + $0x3c] sm:$0xf] %v69_v7 }

// kernel: tile.11
= control target key start
LH: loop header
LB: loop body
LE: loop exit
PB: predicated region body
PF: predicated region fallthrough
CT: control target
= control target key end

     0   :  { %vm68_vm0 = vcmask 1047556   ;;  %s167_s9 = smov 16   ;;  %s168_s10 = smov 8   ;;  %vm70_vm1 = vcmask 64512   ;;  %vm89_vm2 = vcmask 261312   ;;  %vm110_vm3 = vcmask 195712   ;;  %s259_s0 = inlined_call_operand.vmem [shape: f32[2,8,4,8], index: 0, kind: input, shape index: {}]   ;;  %s260_s1 = inlined_call_operand.vmem [shape: f32[16,32], index: 1, kind: output, shape index: {}]  }
   0x1   :  { %v152_v0 = vld [vmem:[%s259_s0 + $0x1c] sm:$0xf]  ;;  %v153_v1 = vld [vmem:[%s259_s0 + $0x18] sm:$0xf]  ;;  %v154_v2 = vld [vmem:[%s259_s0 + $0x14] sm:$0xf] }
   0x2   :  { %39 = vst [vmem:[#allocation0 + $0x38] sm:$0xf] %v152_v0  ;;  %v155_v3 = vld [vmem:[%s259_s0 + $0x10] sm:$0xf]  ;;  %v156_v4 = vld [vmem:[%s259_s0 + $0xc] sm:$0xf] }
   0x3   :  { %43 = vst [vmem:[#allocation0 + $0x30] sm:$0xf] %v153_v1  ;;  %v157_v5 = vld [vmem:[%s259_s0 + $0x8] sm:$0xf]  ;;  %v158_v6 = vld [vmem:[%s259_s0 + $0x4] sm:$0xf] }
   0x4   :  { %47 = vst [vmem:[#allocation0 + $0x28] sm:$0xf] %v154_v2  ;;  %v64_v7 = vld [vmem:[%s259_s0] sm:$0xf]  ;;  %v144_v8 = vld [vmem:[%s259_s0 + $0x3c] sm:$0xf] }
   0x5   :  { %51 = vst [vmem:[#allocation0 + $0x20] sm:$0xf] %v155_v3  ;;  %v145_v9 = vld [vmem:[%s259_s0 + $0x38] sm:$0xf]  ;;  %v146_v10 = vld [vmem:[%s259_s0 + $0x34] sm:$0xf] }
   0x6   :  { %55 = vst [vmem:[#allocation0 + $0x18] sm:$0xf] %v156_v4  ;;  %v147_v11 = vld [vmem:[%s259_s0 + $0x30] sm:$0xf]  ;;  %v148_v12 = vld [vmem:[%s259_s0 + $0x2c] sm:$0xf] }
   0x7   :  { %59 = vst [vmem:[#allocation0 + $0x10] sm:$0xf] %v157_v5  ;;  %v149_v13 = vld [vmem:[%s259_s0 + $0x28] sm:$0xf]  ;;  %v150_v15 = vld [vmem:[%s259_s0 + $0x24] sm:$0xf] }
   0x8   :  { %63 = vst [vmem:[#allocation0 + $0x8] sm:$0xf] %v158_v6  ;;  %v151_v17 = vld [vmem:[%s259_s0 + $0x20] sm:$0xf]  ;;  %s166_s0 = smov 24   ;;  %vm131_vm4 = vcmask 130112  }
   0x9   :  { %65 = vst [vmem:[#allocation0] sm:$0xf] %v64_v7 }
   0xa   :  { %7 = vst [vmem:[#allocation0 + $0x78] sm:$0xf] %v144_v8 }
   0xb   :  { %11 = vst [vmem:[#allocation0 + $0x70] sm:$0xf] %v145_v9 }
   0xc   :  { %v84_v14 = vld [vmem:[#allocation0 + $0x3] ss:$8 sm:$0xf0]   ;;  %15 = vst [vmem:[#allocation0 + $0x68] sm:$0xf] %v146_v10 }
   0xd   :  { %v105_v16 = vld [vmem:[#allocation0 + $0x2] ss:$8 sm:$0xf0]   ;;  %19 = vst [vmem:[#allocation0 + $0x60] sm:$0xf] %v147_v11 }
   0xe   :  { %23 = vst [vmem:[#allocation0 + $0x58] sm:$0xf] %v148_v12  ;;  %v126_v18 = vld [vmem:[#allocation0 + $0x1] ss:$8 sm:$0xf0]  }
   0xf   :  { %27 = vst [vmem:[#allocation0 + $0x50] sm:$0xf] %v149_v13  ;;  %v67_v35 = vld [vmem:[#allocation0] ss:$8 sm:$0xf0]  }
  0x10   :  { %v82_v19 = vld [vmem:[#allocation0 + $0x3] ss:$8 sm:$0xf]   ;;  %v103_v20 = vld [vmem:[#allocation0 + $0x2] ss:$8 sm:$0xf]  }
  0x11   :  { %v86_v21 = vsel %vm68_vm0, %v84_v14, %v82_v19  ;;  %v107_v22 = vsel %vm68_vm0, %v105_v16, %v103_v20  ;;  %v124_v23 = vld [vmem:[#allocation0 + $0x1] ss:$8 sm:$0xf]   ;;  %31 = vst [vmem:[#allocation0 + $0x48] sm:$0xf] %v150_v15 }
  0x12   :  { %87 = vrot.lane.b32.xlu0 %v86_v21, %s166_s0  ;;  %108 = vrot.lane.b32.xlu1 %v107_v22, %s167_s9  ;;  %v128_v24 = vsel %vm68_vm0, %v126_v18, %v124_v23  ;;  %35 = vst [vmem:[#allocation0 + $0x40] sm:$0xf] %v151_v17  ;;  %v66_v34 = vld [vmem:[#allocation0] ss:$8 sm:$0xf]  }
  0x13   :  { %129 = vrot.lane.b32.xlu2 %v128_v24, %s168_s10  ;;  %v69_v36 = vsel %vm68_vm0, %v67_v35, %v66_v34 }
  0x14   :  { %v94_v25 = vld [vmem:[#allocation0 + $0x43] ss:$8 sm:$0xf0]   ;;  %v115_v26 = vld [vmem:[#allocation0 + $0x42] ss:$8 sm:$0xf0]  }
  0x15   :  { %v136_v27 = vld [vmem:[#allocation0 + $0x41] ss:$8 sm:$0xf0]   ;;  %71 = vst.msk [vmem:[%s260_s1] sm:$0xff] %vm70_vm1, %v69_v36  }
  0x16   :  { %v75_v38 = vld [vmem:[#allocation0 + $0x40] ss:$8 sm:$0xf0]  }
  0x19   :  { %v92_v28 = vld [vmem:[#allocation0 + $0x43] ss:$8 sm:$0xf]   ;;  %v113_v29 = vld [vmem:[#allocation0 + $0x42] ss:$8 sm:$0xf]  }
  0x1a   :  { %v96_v30 = vsel %vm68_vm0, %v94_v25, %v92_v28  ;;  %v117_v31 = vsel %vm68_vm0, %v115_v26, %v113_v29  ;;  %v134_v32 = vld [vmem:[#allocation0 + $0x41] ss:$8 sm:$0xf]   ;;  %v73_v37 = vld [vmem:[#allocation0 + $0x40] ss:$8 sm:$0xf]  }
  0x1b   :  { %97 = vrot.lane.b32.xlu0 %v96_v30, %s166_s0  ;;  %118 = vrot.lane.b32.xlu1 %v117_v31, %s167_s9  ;;  %v138_v33 = vsel %vm68_vm0, %v136_v27, %v134_v32  ;;  %v77_v40 = vsel %vm68_vm0, %v75_v38, %v73_v37 }
  0x1c   :  { %139 = vrot.lane.b32.xlu2 %v138_v33, %s168_s10  ;;  %159 = vst.msk [vmem:[%s260_s1 + $0x8] sm:$0xff] %vm70_vm1, %v77_v40  }
  0x6d   :  { %v130_v39 = vpop.permute.xlu2 %129  }
  0x76   :  { %v140_v41 = vpop.permute.xlu2 %139  }
  0x84   :  { %v88_v42 = vpop.permute.xlu0 %87   ;;  %v109_v43 = vpop.permute.xlu1 %108  }
  0x85   :  { %90 = vst.msk [vmem:[%s260_s1] sm:$0xff] %vm89_vm2, %v88_v42  }
  0x86   :  { %111 = vst.msk [vmem:[%s260_s1] sm:$0xff] %vm110_vm3, %v109_v43  }
  0x87   :  { %132 = vst.msk [vmem:[%s260_s1] sm:$0xff] %vm131_vm4, %v130_v39  }
  0x8d   :  { %v98_v44 = vpop.permute.xlu0 %97   ;;  %v119_v45 = vpop.permute.xlu1 %118  }
  0x8e   :  { %160 = vst.msk [vmem:[%s260_s1 + $0x8] sm:$0xff] %vm89_vm2, %v98_v44  }
  0x8f   :  { %161 = vst.msk [vmem:[%s260_s1 + $0x8] sm:$0xff] %vm110_vm3, %v119_v45  }
  0x90   :  { %162 = vst.msk [vmem:[%s260_s1 + $0x8] sm:$0xff] %vm131_vm4, %v140_v41  }

// kernel: attention_forward.1
= control target key start
LH: loop header
LB: loop body
LE: loop exit
PB: predicated region body
PF: predicated region fallthrough
CT: control target
= control target key end

     0   :  { %vm29_vm0 = vcmask 261120   ;;  %v88_v11 = vlaneseq  ;;  %v1186_v36 = vmov 0.0   ;;  %vm147_vm2 = vcmask 130048   ;;  %s1597_s1 = inlined_call_operand.vmem [shape: f32[128,128], index: 1, kind: input, shape index: {}]   ;;  %s1598_s0 = inlined_call_operand.vmem [shape: f32[16,32], index: 0, kind: input, shape index: {}]   ;;  %s1599_s2 = inlined_call_operand.vmem [shape: f32[16,128], index: 2, kind: output, shape index: {}]  }
   0x1   :  { %v16_v0 = vld [vmem:[%s1597_s1 + $0x18] sm:$0xff]  ;;  %v15_v1 = vld [vmem:[%s1597_s1 + $0x10] sm:$0xff]  ;;  %v14_v2 = vld [vmem:[%s1597_s1 + $0x8] sm:$0xff] }
   0x2   :  { %48 = vmatpush.msra.mxu1 %v16_v0  ;;  %v13_v3 = vld [vmem:[%s1597_s1] sm:$0xff]  ;;  %v20_v5 = vld [vmem:[%s1597_s1 + $0x38] sm:$0xff]  ;;  %v19_v6 = vld [vmem:[%s1597_s1 + $0x30] sm:$0xff]  ;;  %v1237_v13 = vshrl.u32 %v88_v11, 7  ;;  %v1244_v19 = vand.u32 127, %v88_v11 }
   0x3   :  { %v11_v4 = vld [vmem:[%s1598_s0] sm:$0xff]  ;;  %v18_v7 = vld [vmem:[%s1597_s1 + $0x28] sm:$0xff]  ;;  %v23_v22 = vld [vmem:[%s1597_s1 + $0x50] sm:$0xff] }
   0x4   :  { %49 = vmatpush.msra.mxu1 %v15_v1  ;;  %v17_v8 = vld [vmem:[%s1597_s1 + $0x20] sm:$0xff]  ;;  %v12_v9 = vld [vmem:[%s1598_s0 + $0x8] sm:$0xff]  ;;  %v99_v14 = vshra.s32 %v1237_v13, 5  ;;  %v115_v17 = vand.u32 7, %v1237_v13  ;;  %v1242_v18 = vadd.s32 8, %v1237_v13  ;;  %v24_v23 = vld [vmem:[%s1597_s1 + $0x58] sm:$0xff] }
   0x5   :  { %v22_v21 = vld [vmem:[%s1597_s1 + $0x48] sm:$0xff]  ;;  %v21_v25 = vld [vmem:[%s1597_s1 + $0x40] sm:$0xff]  ;;  %v1264_v32 = vadd.s32 16, %v1237_v13  ;;  %v1274_v42 = vadd.s32 24, %v1237_v13  ;;  %v1279_v46 = vadd.s32 32, %v1237_v13  ;;  %v1290_v54 = vadd.s32 40, %v1237_v13 }
   0x6   :  { %50 = vmatpush.msra.mxu1 %v14_v2  ;;  %v107_v16 = vshll.u32 %v99_v14, 3  ;;  %v100_v24 = vshra.s32 %v1242_v18, 5  ;;  %v116_v31 = vand.u32 7, %v1242_v18  ;;  %v1294_v57 = vadd.s32 48, %v1237_v13 }
   0x7   :  { %v101_v39 = vshra.s32 %v1264_v32, 5  ;;  %v117_v41 = vand.u32 7, %v1264_v32  ;;  %v102_v45 = vshra.s32 %v1274_v42, 5  ;;  %v118_v48 = vand.u32 7, %v1274_v42 }
   0x8   :  { %51 = vmatpush.msra.mxu1 %v13_v3  ;;  %v123_v20 = vor.u32 %v115_v17, %v107_v16  ;;  %v108_v30 = vshll.u32 %v100_v24, 3  ;;  %v103_v49 = vshra.s32 %v1279_v46, 5  ;;  %v119_v53 = vand.u32 7, %v1279_v46 }
   0x9   :  { %1091 = vmatmul.msk.f32.vlgmr.msra.gmra.mxu1 %vm29_vm0, %v11_v4  ;;  %v109_v40 = vshll.u32 %v101_v39, 3  ;;  %v110_v47 = vshll.u32 %v102_v45, 3  ;;  %v1297_v58 = vadd.s32 56, %v1237_v13  ;;  %v104_v59 = vshra.s32 %v1290_v54, 5 }
   0xa   :  { %71 = vmatpush.msrb.mxu1 %v20_v5  ;;  %vm131_vm1 = vcmp.eq.s32.totalorder %v123_v20, %v1244_v19  ;;  %v124_v38 = vor.u32 %v116_v31, %v108_v30  ;;  %v111_v52 = vshll.u32 %v103_v49, 3  ;;  %v121_v60 = vand.u32 7, %v1294_v57 }
   0xb   :  { %v139_v37 = vsel %vm131_vm1, 1.0, %v1186_v36  ;;  %v125_v44 = vor.u32 %v117_v41, %v109_v40  ;;  %v126_v51 = vor.u32 %v118_v48, %v110_v47  ;;  %v122_v61 = vand.u32 7, %v1297_v58 }
   0xc   :  { %72 = vmatpush.msrb.mxu1 %v19_v6  ;;  %vm132_vm3 = vcmp.eq.s32.totalorder %v124_v38, %v1244_v19  ;;  %v127_v55 = vor.u32 %v119_v53, %v111_v52  ;;  %v120_v62 = vand.u32 7, %v1290_v54  ;;  %v267_v63 = vadd.s32 88, %v1237_v13 }
   0xd   :  { %v140_v43 = vsel %vm132_vm3, 1.0, %v1186_v36  ;;  %vm133_vm4 = vcmp.eq.s32.totalorder %v125_v44, %v1244_v19  ;;  %vm134_vm5 = vcmp.eq.s32.totalorder %v126_v51, %v1244_v19  ;;  %v266_v0 = vadd.s32 80, %v1237_v13 }
   0xe   :  { %73 = vmatpush.msrb.mxu1 %v18_v7  ;;  %v141_v50 = vsel %vm133_vm4, 1.0, %v1186_v36  ;;  %v142_v56 = vsel %vm134_vm5, 1.0, %v1186_v36  ;;  %vm135_vm6 = vcmp.eq.s32.totalorder %v127_v55, %v1244_v19  ;;  %v265_v1 = vadd.s32 72, %v1237_v13 }
   0xf   :  { %v264_v2 = vadd.s32 64, %v1237_v13  ;;  %vm287_vm7 = vcmp.eq.s32.totalorder %v122_v61, %v1244_v19  ;;  %vm286_vm8 = vcmp.eq.s32.totalorder %v121_v60, %v1244_v19  ;;  %v112_v3 = vshll.u32 %v104_v59, 3 }
  0x10   :  { %74 = vmatpush.msrb.mxu1 %v17_v8  ;;  %v274_v5 = vand.u32 7, %v266_v0  ;;  %v273_v6 = vand.u32 7, %v265_v1  ;;  %v1187_v7 = vmov 1.0   ;;  %vm285_vm9 = vcmp.eq.s32.totalorder %v120_v62, %v1244_v19 }
  0x11   :  { %1092 = vmatmul.msk.f32.gmra.mxu1 %vm29_vm0, %v12_v9  ;;  %1107 = vmatpush.msk.msra.mxu0 %vm287_vm7, %v1187_v7  ;;  %vm283_vm10 = vcmp.eq.s32.totalorder %v118_v48, %v1244_v19  ;;  %vm282_vm11 = vcmp.eq.s32.totalorder %v117_v41, %v1244_v19  ;;  %v272_v8 = vand.u32 7, %v264_v2  ;;  %vm284_vm14 = vcmp.eq.s32.totalorder %v119_v53, %v1244_v19 }
  0x12   :  { %vm290_vm13 = vcmp.eq.s32.totalorder %v274_v5, %v1244_v19  ;;  %1103 = vmatpush.msk.msra.mxu3 %vm283_vm10, %v1187_v7  ;;  %v105_v11 = vshra.s32 %v1294_v57, 5  ;;  %vm289_vm15 = vcmp.eq.s32.totalorder %v273_v6, %v1244_v19  ;;  %v106_v16 = vshra.s32 %v1297_v58, 5 }
  0x13   :  { %1108 = vmatpush.msk.msra.mxu0 %vm286_vm8, %v1187_v7  ;;  %vm288_vm1 = vcmp.eq.s32.totalorder %v272_v8, %v1244_v19  ;;  %vm280_vm7 = vcmp.eq.s32.totalorder %v115_v17, %v1244_v19  ;;  %v213_v24 = vshra.s32 %v1237_v13, 3  ;;  %v216_v38 = vshra.s32 %v1274_v42, 3 }
  0x14   :  { %1104 = vmatpush.msk.msra.mxu3 %vm282_vm11, %v1187_v7  ;;  %v114_v20 = vshll.u32 %v106_v16, 3  ;;  %v217_v44 = vshra.s32 %v1279_v46, 3 }
  0x15   :  { %1109 = vmatpush.msk.msra.mxu0 %vm285_vm9, %v1187_v7  ;;  %v1400_v40 = vand.u32 3, %v216_v38 }
  0x16   :  { %v1410_v47 = vand.u32 3, %v217_v44 }
  0x17   :  { %1110 = vmatpush.msk.msra.mxu0 %vm284_vm14, %v1187_v7 }
  0x19   :  { %1093 = vmatmul.msk.f32.vlgmr.msrb.gmra.mxu1 %vm29_vm0, %v11_v4  ;;  %v275_v4 = vand.u32 7, %v267_v63  ;;  %557 = vmatpush.msra.mxu0 %v1186_v36  ;;  %v220_v63 = vshra.s32 %v1297_v58, 3 }
  0x1b   :  { %vm291_vm12 = vcmp.eq.s32.totalorder %v275_v4, %v1244_v19  ;;  %558 = vmatpush.msra.mxu0 %v1186_v36  ;;  %v1440_v1 = vand.u32 3, %v220_v63 }
  0x1c   :  { %1111 = vmatpush.msk.msra.mxu1 %vm291_vm12, %v1187_v7 }
  0x1d   :  { %559 = vmatpush.msra.mxu0 %v1186_v36 }
  0x1e   :  { %1112 = vmatpush.msk.msra.mxu1 %vm290_vm13, %v1187_v7 }
  0x1f   :  { %560 = vmatpush.msra.mxu0 %v1186_v36 }
  0x20   :  { %1113 = vmatpush.msk.msra.mxu1 %vm289_vm15, %v1187_v7 }
  0x21   :  { %1094 = vmatmul.msk.f32.gmra.mxu1 %vm29_vm0, %v12_v9  ;;  %v143_v9 = vsel %vm135_vm6, 1.0, %v1186_v36  ;;  %vm281_vm6 = vcmp.eq.s32.totalorder %v116_v31, %v1244_v19  ;;  %v215_v31 = vshra.s32 %v1264_v32, 3 }
  0x22   :  { %1114 = vmatpush.msk.msra.mxu1 %vm288_vm1, %v1187_v7  ;;  %1105 = vmatpush.msk.msra.mxu3 %vm281_vm6, %v1187_v7 }
  0x24   :  { %594 = vmatpush.msra.mxu1 %v1186_v36  ;;  %1106 = vmatpush.msk.msra.mxu3 %vm280_vm7, %v1187_v7 }
  0x26   :  { %595 = vmatpush.msra.mxu1 %v1186_v36 }
  0x28   :  { %596 = vmatpush.msra.mxu1 %v1186_v36 }
  0x2a   :  { %597 = vmatpush.msra.mxu1 %v1186_v36 }
  0x2c   :  { %598 = vmatpush.msra.mxu1 %v1186_v36 }
  0x2e   :  { %599 = vmatpush.msra.mxu1 %v1186_v36 }
  0x30   :  { %600 = vmatpush.msra.mxu1 %v1186_v36 }
  0x32   :  { %601 = vmatpush.msra.mxu1 %v1186_v36 }
  0x86   :  { %v53_v10 = vpop.f32.mrf.mxu1 }
  0x87   :  { %v82_v33 = vmul.f32 %v53_v10, %v21_v25  ;;  %v128_v10 = vor.u32 %v120_v62, %v112_v3  ;;  %v230_v25 = vand.u32 31, %v1244_v19 }
  0x89   :  { %vm136_vm3 = vcmp.eq.s32.totalorder %v128_v10, %v1244_v19 }
  0x8a   :  { %v144_v14 = vsel %vm136_vm3, 1.0, %v1186_v36 }
  0x8e   :  { %v56_v12 = vpop.f32.mrf.mxu1 }
  0x8f   :  { %v83_v27 = vmul.f32 %v56_v12, %v22_v21  ;;  %v113_v12 = vshll.u32 %v105_v11, 3 }
  0x96   :  { %v76_v15 = vpop.f32.mrf.mxu1 }
  0x97   :  { %v84_v28 = vmul.f32 %v76_v15, %v23_v22  ;;  %v129_v15 = vor.u32 %v121_v60, %v113_v12  ;;  %v130_v22 = vor.u32 %v122_v61, %v114_v20 }
  0x99   :  { %v86_v35 = vadd.f32 %v84_v28, %v82_v33  ;;  %vm137_vm4 = vcmp.eq.s32.totalorder %v129_v15, %v1244_v19  ;;  %vm138_vm5 = vcmp.eq.s32.totalorder %v130_v22, %v1244_v19  ;;  %v214_v28 = vshra.s32 %v1242_v18, 3 }
  0x9a   :  { %v145_v21 = vsel %vm137_vm4, 1.0, %v1186_v36 }
  0x9b   :  { %v1380_v17 = vand.u32 3, %v214_v28 }
  0x9e   :  { %v79_v26 = vpop.f32.mrf.mxu1 }
  0x9f   :  { %v85_v29 = vmul.f32 %v79_v26, %v24_v23  ;;  %v146_v23 = vsel %vm138_vm5, 1.0, %v1186_v36  ;;  %v1368_v26 = vand.u32 3, %v213_v24 }
  0xa1   :  { %v87_v34 = vadd.f32 %v85_v29, %v83_v27  ;;  %v1370_v27 = vshra.s32 %v230_v25, 3 }
  0xa3   :  { %186 = vmatpush.msra.mxu2 %v87_v34  ;;  %vm232_vm8 = vcmp.eq.s32.totalorder %v1370_v27, %v1368_v26  ;;  %vm233_vm10 = vcmp.eq.s32.totalorder %v1370_v27, %v1380_v17  ;;  %v1390_v34 = vand.u32 3, %v215_v31  ;;  %vm235_vm14 = vcmp.eq.s32.totalorder %v1370_v27, %v1400_v40 }
  0xa4   :  { %vm236_vm1 = vcmp.eq.s32.totalorder %v1370_v27, %v1410_v47 }
  0xa5   :  { %187 = vmatpush.msra.mxu2 %v86_v35  ;;  %vm234_vm12 = vcmp.eq.s32.totalorder %v1370_v27, %v1390_v34 }
  0xa6   :  { %1095 = vmatmul.msk.f32.vlgmr.msra.gmra.mxu2 %vm147_vm2, %v139_v37 }
  0xae   :  { %1096 = vmatmul.msk.f32.gmra.mxu2 %vm147_vm2, %v140_v43 }
  0xb6   :  { %1097 = vmatmul.msk.f32.gmra.mxu2 %vm147_vm2, %v141_v50  ;;  %v218_v50 = vshra.s32 %v1290_v54, 3 }
  0xb8   :  { %v1420_v52 = vand.u32 3, %v218_v50 }
  0xba   :  { %vm237_vm4 = vcmp.eq.s32.totalorder %v1370_v27, %v1420_v52 }
  0xbe   :  { %1098 = vmatmul.msk.f32.gmra.mxu2 %vm147_vm2, %v142_v56  ;;  %v219_v56 = vshra.s32 %v1294_v57, 3 }
  0xc0   :  { %v1430_v60 = vand.u32 3, %v219_v56 }
  0xc2   :  { %vm238_vm6 = vcmp.eq.s32.totalorder %v1370_v27, %v1430_v60 }
  0xc6   :  { %1099 = vmatmul.msk.f32.gmra.mxu2 %vm147_vm2, %v143_v9 }
  0xce   :  { %1100 = vmatmul.msk.f32.gmra.mxu2 %vm147_vm2, %v144_v14 }
  0xd6   :  { %1101 = vmatmul.msk.f32.gmra.mxu2 %vm147_vm2, %v145_v21 }
  0xde   :  { %1102 = vmatmul.msk.f32.gmra.mxu2 %vm147_vm2, %v146_v23  ;;  %vm229_vm2 = vcmp.lt.s32.totalorder %v1244_v19, 96 }
  0xdf   :  { %vm240_vm9 = vmand %vm229_vm2, %vm232_vm8  ;;  %vm239_vm8 = vcmp.eq.s32.totalorder %v1370_v27, %v1440_v1 }
  0xe0   :  { %v248_v29 = vsel %vm240_vm9, 1.0, %v1186_v36  ;;  %vm241_vm11 = vmand %vm229_vm2, %vm233_vm10 }
  0xe1   :  { %v249_v35 = vsel %vm241_vm11, 1.0, %v1186_v36  ;;  %vm242_vm13 = vmand %vm229_vm2, %vm234_vm12  ;;  %vm726_vm11 = vcmp.ge.s32.totalorder %v1237_v13, %v1244_v19 }
  0xe2   :  { %v250_v41 = vsel %vm242_vm13, 1.0, %v1186_v36  ;;  %vm243_vm15 = vmand %vm229_vm2, %vm235_vm14  ;;  %vm750_vm13 = vcmask 523264  }
  0xe3   :  { %v251_v48 = vsel %vm243_vm15, 1.0, %v1186_v36  ;;  %vm244_vm3 = vmand %vm229_vm2, %vm236_vm1  ;;  %vm727_vm15 = vcmp.ge.s32.totalorder %v1242_v18, %v1244_v19 }
  0xe4   :  { %v252_v53 = vsel %vm244_vm3, 1.0, %v1186_v36  ;;  %vm245_vm5 = vmand %vm229_vm2, %vm237_vm4  ;;  %vm728_vm4 = vcmp.ge.s32.totalorder %v1264_v32, %v1244_v19 }
  0xe5   :  { %v253_v61 = vsel %vm245_vm5, 1.0, %v1186_v36  ;;  %vm246_vm7 = vmand %vm229_vm2, %vm238_vm6 }
  0xe6   :  { %v254_v2 = vsel %vm246_vm7, 1.0, %v1186_v36  ;;  %vm247_vm9 = vmand %vm229_vm2, %vm239_vm8  ;;  %vm627_vm2 = vcmask 64512   ;;  %vm729_vm7 = vcmp.ge.s32.totalorder %v1274_v42, %v1244_v19 }
  0xe7   :  { %v255_v5 = vsel %vm247_vm9, 1.0, %v1186_v36 }
 0x129   :  { %v189_v30 = vpop.f32.mrf.mxu2 }
 0x12a   :  { %v256_v33 = vmul.f32 %v248_v29, %v189_v30 }
 0x12c   :  { %520 = vmatmul.f32.vlgmr.msra.gmra.mxu3 %v256_v33  ;;  %561 = vmatmul.f32.vlgmr.msra.gmra.mxu0 %v256_v33 }
 0x12d   :  { %602 = vmatmul.f32.vlgmr.msra.gmra.mxu1 %v256_v33 }
 0x131   :  { %v192_v37 = vpop.f32.mrf.mxu2 }
 0x132   :  { %v257_v39 = vmul.f32 %v249_v35, %v192_v37 }
 0x134   :  { %523 = vmatmul.f32.gmra.mxu3 %v257_v39  ;;  %564 = vmatmul.f32.gmra.mxu0 %v257_v39 }
 0x135   :  { %605 = vmatmul.f32.gmra.mxu1 %v257_v39 }
 0x139   :  { %v195_v43 = vpop.f32.mrf.mxu2 }
 0x13a   :  { %v258_v45 = vmul.f32 %v250_v41, %v195_v43 }
 0x13c   :  { %526 = vmatmul.f32.gmra.mxu3 %v258_v45  ;;  %567 = vmatmul.f32.gmra.mxu0 %v258_v45 }
 0x13d   :  { %608 = vmatmul.f32.gmra.mxu1 %v258_v45 }
 0x141   :  { %v198_v49 = vpop.f32.mrf.mxu2 }
 0x142   :  { %v259_v51 = vmul.f32 %v251_v48, %v198_v49 }
 0x144   :  { %529 = vmatmul.f32.gmra.mxu3 %v259_v51  ;;  %570 = vmatmul.f32.gmra.mxu0 %v259_v51 }
 0x145   :  { %611 = vmatmul.f32.gmra.mxu1 %v259_v51  ;;  %v1465_v51 = vshra.s32 %v1244_v19, 3 }
 0x147   :  { %vm718_vm10 = vcmp.eq.s32.totalorder %v213_v24, %v1465_v51  ;;  %vm719_vm14 = vcmp.eq.s32.totalorder %v214_v28, %v1465_v51  ;;  %vm720_vm3 = vcmp.eq.s32.totalorder %v215_v31, %v1465_v51  ;;  %vm721_vm6 = vcmp.eq.s32.totalorder %v216_v38, %v1465_v51 }
 0x148   :  { %vm734_vm12 = vmand %vm718_vm10, %vm726_vm11  ;;  %vm722_vm9 = vcmp.eq.s32.totalorder %v217_v44, %v1465_v51  ;;  %vm730_vm10 = vcmp.ge.s32.totalorder %v1279_v46, %v1244_v19 }
 0x149   :  { %v201_v55 = vpop.f32.mrf.mxu2  ;;  %vm735_vm1 = vmand %vm719_vm14, %vm727_vm15  ;;  %vm731_vm14 = vcmp.ge.s32.totalorder %v1290_v54, %v1244_v19 }
 0x14a   :  { %v260_v59 = vmul.f32 %v252_v53, %v201_v55  ;;  %vm736_vm5 = vmand %vm720_vm3, %vm728_vm4  ;;  %vm732_vm3 = vcmp.ge.s32.totalorder %v1294_v57, %v1244_v19 }
 0x14b   :  { %vm737_vm8 = vmand %vm721_vm6, %vm729_vm7  ;;  %vm733_vm6 = vcmp.ge.s32.totalorder %v1297_v58, %v1244_v19 }
 0x14c   :  { %532 = vmatmul.f32.gmra.mxu3 %v260_v59  ;;  %573 = vmatmul.f32.gmra.mxu0 %v260_v59  ;;  %vm738_vm11 = vmand %vm722_vm9, %vm730_vm10  ;;  %vm1003_vm9 = vcmp.eq.s32.totalorder %v1465_v51, %v1440_v1  ;;  %vm1002_vm10 = vcmp.eq.s32.totalorder %v1465_v51, %v1430_v60 }
 0x14d   :  { %614 = vmatmul.f32.gmra.mxu1 %v260_v59 }
 0x151   :  { %v204_v62 = vpop.f32.mrf.mxu2 }
 0x152   :  { %v261_v0 = vmul.f32 %v253_v61, %v204_v62 }
 0x154   :  { %535 = vmatmul.f32.gmra.mxu3 %v261_v0  ;;  %576 = vmatmul.f32.gmra.mxu0 %v261_v0 }
 0x155   :  { %617 = vmatmul.f32.gmra.mxu1 %v261_v0 }
 0x159   :  { %v207_v3 = vpop.f32.mrf.mxu2 }
 0x15a   :  { %v262_v4 = vmul.f32 %v254_v2, %v207_v3 }
 0x15c   :  { %538 = vmatmul.f32.gmra.mxu3 %v262_v4  ;;  %579 = vmatmul.f32.gmra.mxu0 %v262_v4 }
 0x15d   :  { %620 = vmatmul.f32.gmra.mxu1 %v262_v4 }
 0x161   :  { %v210_v6 = vpop.f32.mrf.mxu2 }
 0x162   :  { %v263_v8 = vmul.f32 %v255_v5, %v210_v6 }
 0x164   :  { %541 = vmatmul.f32.gmra.mxu3 %v263_v8  ;;  %582 = vmatmul.f32.gmra.mxu0 %v263_v8 }
 0x165   :  { %623 = vmatmul.f32.gmra.mxu1 %v263_v8 }
 0x1a9   :  { %v562_v9 = vpop.f32.mrf.mxu0 }
 0x1aa   :  { %v603_v10 = vpop.f32.mrf.mxu1 }
 0x1af   :  { %v521_v35 = vpop.f32.mrf.mxu3 }
 0x1b1   :  { %v565_v11 = vpop.f32.mrf.mxu0 }
 0x1b2   :  { %v606_v12 = vpop.f32.mrf.mxu1 }
 0x1b7   :  { %v524_v37 = vpop.f32.mrf.mxu3 }
 0x1b9   :  { %v568_v14 = vpop.f32.mrf.mxu0 }
 0x1ba   :  { %v609_v15 = vpop.f32.mrf.mxu1 }
 0x1bf   :  { %v527_v39 = vpop.f32.mrf.mxu3 }
 0x1c1   :  { %v571_v16 = vpop.f32.mrf.mxu0 }
 0x1c2   :  { %v612_v20 = vpop.f32.mrf.mxu1 }
 0x1c7   :  { %v530_v41 = vpop.f32.mrf.mxu3 }
 0x1c9   :  { %v574_v21 = vpop.f32.mrf.mxu0 }
 0x1ca   :  { %v615_v22 = vpop.f32.mrf.mxu1 }
 0x1cf   :  { %v533_v43 = vpop.f32.mrf.mxu3 }
 0x1d1   :  { %v577_v23 = vpop.f32.mrf.mxu0 }
 0x1d2   :  { %v618_v25 = vpop.f32.mrf.mxu1 }
 0x1d7   :  { %v536_v45 = vpop.f32.mrf.mxu3 }
 0x1d9   :  { %v580_v27 = vpop.f32.mrf.mxu0 }
 0x1da   :  { %v621_v29 = vpop.f32.mrf.mxu1 }
 0x1df   :  { %v539_v48 = vpop.f32.mrf.mxu3 }
 0x1e1   :  { %v583_v30 = vpop.f32.mrf.mxu0 }
 0x1e2   :  { %v624_v33 = vpop.f32.mrf.mxu1  ;;  %1115 = vmatpush.xpose.msk.msrb.mxu2 %vm627_vm2, %v583_v30 }
 0x1e3   :  { %855 = vmatpush.msrb.mxu3 %v624_v33 }
 0x1e5   :  { %856 = vmatpush.msrb.mxu3 %v621_v29 }
 0x1e6   :  { %1116 = vmatpush.xpose.msk.msrb.mxu2 %vm627_vm2, %v580_v27 }
 0x1e7   :  { %857 = vmatpush.msrb.mxu3 %v618_v25  ;;  %v542_v49 = vpop.f32.mrf.mxu3 }
 0x1e9   :  { %858 = vmatpush.msrb.mxu3 %v615_v22 }
 0x1ea   :  { %1117 = vmatpush.xpose.msk.msrb.mxu2 %vm627_vm2, %v577_v23 }
 0x1eb   :  { %859 = vmatpush.msrb.mxu3 %v612_v20 }
 0x1ed   :  { %860 = vmatpush.msrb.mxu3 %v609_v15 }
 0x1ee   :  { %1118 = vmatpush.xpose.msk.msrb.mxu2 %vm627_vm2, %v574_v21 }
 0x1ef   :  { %861 = vmatpush.msrb.mxu3 %v606_v12 }
 0x1f1   :  { %862 = vmatpush.msrb.mxu3 %v603_v10 }
 0x1f2   :  { %1119 = vmatpush.xpose.msk.msrb.mxu2 %vm627_vm2, %v571_v16 }
 0x1f6   :  { %1120 = vmatpush.xpose.msk.msrb.mxu2 %vm627_vm2, %v568_v14 }
 0x1fa   :  { %1121 = vmatpush.xpose.msk.msrb.mxu2 %vm627_vm2, %v565_v11 }
 0x1fe   :  { %1122 = vmatpush.xpose.msk.msrb.mxu2 %vm627_vm2, %v562_v9 }
 0x201   :  { %1123 = vmatmul.msk.f32.vlgmr.msrb.gmra.mxu2 %vm627_vm2, %v521_v35 }
 0x209   :  { %1124 = vmatmul.msk.f32.gmra.mxu2 %vm627_vm2, %v524_v37 }
 0x211   :  { %1125 = vmatmul.msk.f32.gmra.mxu2 %vm627_vm2, %v527_v39 }
 0x219   :  { %1126 = vmatmul.msk.f32.gmra.mxu2 %vm627_vm2, %v530_v41 }
 0x221   :  { %1127 = vmatmul.msk.f32.gmra.mxu2 %vm627_vm2, %v533_v43 }
 0x229   :  { %1128 = vmatmul.msk.f32.gmra.mxu2 %vm627_vm2, %v536_v45 }
 0x231   :  { %1129 = vmatmul.msk.f32.gmra.mxu2 %vm627_vm2, %v539_v48 }
 0x239   :  { %1130 = vmatmul.msk.f32.gmra.mxu2 %vm627_vm2, %v542_v49 }
 0x284   :  { %v693_v53 = vpop.f32.mrf.mxu2 }
 0x285   :  { %v742_v55 = vsel %vm734_vm12, %v693_v53, -1e+30  ;;  %vm723_vm12 = vcmp.eq.s32.totalorder %v218_v50, %v1465_v51 }
 0x286   :  { %v751_v59 = vsel %vm750_vm13, %v742_v55, -inf  ;;  %vm739_vm15 = vmand %vm723_vm12, %vm731_vm14  ;;  %vm999_vm12 = vcmp.eq.s32.totalorder %v1465_v51, %v1400_v40  ;;  %vm998_vm14 = vcmp.eq.s32.totalorder %v1465_v51, %v1390_v34 }
 0x287   :  { %752 = vmax.xlane.f32.xlu0 %v751_v59 }
 0x28c   :  { %v696_v61 = vpop.f32.mrf.mxu2 }
 0x28d   :  { %v743_v24 = vsel %vm735_vm1, %v696_v61, -1e+30  ;;  %vm724_vm1 = vcmp.eq.s32.totalorder %v219_v56, %v1465_v51 }
 0x28e   :  { %v754_v62 = vsel %vm750_vm13, %v743_v24, -inf  ;;  %vm740_vm4 = vmand %vm724_vm1, %vm732_vm3  ;;  %vm996_vm1 = vcmp.eq.s32.totalorder %v1465_v51, %v1368_v26  ;;  %v28_v26 = vld [vmem:[%s1597_s1 + $0x78] sm:$0xff] }
 0x28f   :  { %755 = vmax.xlane.f32.xlu0 %v754_v62 }
 0x294   :  { %v699_v0 = vpop.f32.mrf.mxu2 }
 0x295   :  { %v744_v2 = vsel %vm736_vm5, %v699_v0, -1e+30  ;;  %vm725_vm5 = vcmp.eq.s32.totalorder %v220_v63, %v1465_v51 }
 0x296   :  { %v757_v28 = vsel %vm750_vm13, %v744_v2, -inf  ;;  %vm741_vm7 = vmand %vm725_vm5, %vm733_vm6 }
 0x297   :  { %758 = vmax.xlane.f32.xlu1 %v757_v28 }
 0x29c   :  { %v702_v3 = vpop.f32.mrf.mxu2 }
 0x29d   :  { %v745_v4 = vsel %vm737_vm8, %v702_v3, -1e+30 }
 0x29e   :  { %v760_v31 = vsel %vm750_vm13, %v745_v4, -inf }
 0x29f   :  { %761 = vmax.xlane.f32.xlu1 %v760_v31 }
 0x2a4   :  { %v705_v32 = vpop.f32.mrf.mxu2 }
 0x2a5   :  { %v746_v5 = vsel %vm738_vm11, %v705_v32, -1e+30  ;;  %vm1001_vm11 = vcmp.eq.s32.totalorder %v1465_v51, %v1420_v52 }
 0x2a6   :  { %v763_v38 = vsel %vm750_vm13, %v746_v5, -inf }
 0x2a7   :  { %764 = vmax.xlane.f32.xlu2 %v763_v38  ;;  %v928_v38 = vand.u32 7, %v1244_v19 }
 0x2a9   :  { %vm929_vm8 = vcmp.eq.s32.totalorder %v928_v38, %v1237_v13 }
 0x2aa   :  { %1139 = vmatpush.msk.msrb.mxu0 %vm929_vm8, %v1187_v7 }
 0x2ac   :  { %v708_v42 = vpop.f32.mrf.mxu2 }
 0x2ad   :  { %v747_v6 = vsel %vm739_vm15, %v708_v42, -1e+30  ;;  %vm997_vm15 = vcmp.eq.s32.totalorder %v1465_v51, %v1380_v17 }
 0x2ae   :  { %v766_v44 = vsel %vm750_vm13, %v747_v6, -inf  ;;  %v1005_v34 = vsel %vm997_vm15, 1.0, %v1186_v36 }
 0x2af   :  { %767 = vmax.xlane.f32.xlu2 %v766_v44 }
 0x2b4   :  { %v711_v46 = vpop.f32.mrf.mxu2 }
 0x2b5   :  { %v748_v8 = vsel %vm740_vm4, %v711_v46, -1e+30 }
 0x2b6   :  { %v769_v50 = vsel %vm750_vm13, %v748_v8, -inf }
 0x2b7   :  { %770 = vmax.xlane.f32.xlu0 %v769_v50 }
 0x2bc   :  { %v714_v54 = vpop.f32.mrf.mxu2 }
 0x2bd   :  { %v749_v9 = vsel %vm741_vm7, %v714_v54, -1e+30 }
 0x2be   :  { %v772_v56 = vsel %vm750_vm13, %v749_v9, -inf }
 0x2bf   :  { %773 = vmax.xlane.f32.xlu1 %v772_v56 }
 0x2fa   :  { %v753_v57 = vpop.xlane.xlu0 %752 }
 0x2fb   :  { %v775_v10 = vsub.f32 %v742_v55, %v753_v57 }
 0x2fd   :  { %v783_v11 = vmul.f32 1.442695, %v775_v10 }
 0x2ff   :  { %1154 = vpow2.f32 %v783_v11 }
 0x302   :  { %v756_v12 = vpop.xlane.xlu0 %755 }
 0x303   :  { %v776_v14 = vsub.f32 %v743_v24, %v756_v12 }
 0x305   :  { %v1155_v15 = vpop.eup %1154  ;;  %v785_v16 = vmul.f32 1.442695, %v776_v14 }
 0x306   :  { %1131 = vmatmul.msk.f32.vlgmr.msrb.gmra.mxu3 %vm750_vm13, %v1155_v15  ;;  %v799_v63 = vsel %vm750_vm13, %v1155_v15, 0.0 }
 0x307   :  { %1156 = vpow2.f32 %v785_v16  ;;  %800 = vadd.xlane.f32.xlu2 %v799_v63 }
 0x30a   :  { %v759_v58 = vpop.xlane.xlu1 %758 }
 0x30b   :  { %v777_v20 = vsub.f32 %v744_v2, %v759_v58 }
 0x30d   :  { %v1157_v21 = vpop.eup %1156  ;;  %v787_v22 = vmul.f32 1.442695, %v777_v20 }
 0x30e   :  { %1132 = vmatmul.msk.f32.gmra.mxu3 %vm750_vm13, %v1157_v21  ;;  %v802_v23 = vsel %vm750_vm13, %v1157_v21, 0.0 }
 0x30f   :  { %1158 = vpow2.f32 %v787_v22  ;;  %803 = vadd.xlane.f32.xlu0 %v802_v23 }
 0x312   :  { %v762_v25 = vpop.xlane.xlu1 %761 }
 0x313   :  { %v778_v27 = vsub.f32 %v745_v4, %v762_v25 }
 0x315   :  { %v1159_v29 = vpop.eup %1158  ;;  %v789_v30 = vmul.f32 1.442695, %v778_v27 }
 0x316   :  { %1133 = vmatmul.msk.f32.gmra.mxu3 %vm750_vm13, %v1159_v29  ;;  %v805_v33 = vsel %vm750_vm13, %v1159_v29, 0.0 }
 0x317   :  { %1160 = vpow2.f32 %v789_v30  ;;  %806 = vadd.xlane.f32.xlu1 %v805_v33 }
 0x31a   :  { %v765_v35 = vpop.xlane.xlu2 %764 }
 0x31b   :  { %v779_v37 = vsub.f32 %v746_v5, %v765_v35 }
 0x31d   :  { %v1161_v39 = vpop.eup %1160  ;;  %v791_v41 = vmul.f32 1.442695, %v779_v37 }
 0x31e   :  { %1134 = vmatmul.msk.f32.gmra.mxu3 %vm750_vm13, %v1161_v39  ;;  %v808_v43 = vsel %vm750_vm13, %v1161_v39, 0.0 }
 0x31f   :  { %1162 = vpow2.f32 %v791_v41  ;;  %809 = vadd.xlane.f32.xlu2 %v808_v43 }
 0x322   :  { %v768_v45 = vpop.xlane.xlu2 %767 }
 0x323   :  { %v780_v48 = vsub.f32 %v747_v6, %v768_v45 }
 0x325   :  { %v1163_v49 = vpop.eup %1162  ;;  %v793_v53 = vmul.f32 1.442695, %v780_v48 }
 0x326   :  { %1135 = vmatmul.msk.f32.gmra.mxu3 %vm750_vm13, %v1163_v49  ;;  %v811_v55 = vsel %vm750_vm13, %v1163_v49, 0.0 }
 0x327   :  { %1164 = vpow2.f32 %v793_v53  ;;  %812 = vadd.xlane.f32.xlu0 %v811_v55 }
 0x32a   :  { %v771_v59 = vpop.xlane.xlu0 %770 }
 0x32b   :  { %v781_v61 = vsub.f32 %v748_v8, %v771_v59 }
 0x32d   :  { %v1165_v24 = vpop.eup %1164  ;;  %v795_v62 = vmul.f32 1.442695, %v781_v61 }
 0x32e   :  { %1136 = vmatmul.msk.f32.gmra.mxu3 %vm750_vm13, %v1165_v24  ;;  %v814_v0 = vsel %vm750_vm13, %v1165_v24, 0.0 }
 0x32f   :  { %1166 = vpow2.f32 %v795_v62  ;;  %815 = vadd.xlane.f32.xlu1 %v814_v0 }
 0x332   :  { %v774_v2 = vpop.xlane.xlu1 %773 }
 0x333   :  { %v782_v28 = vsub.f32 %v749_v9, %v774_v2 }
 0x335   :  { %v1167_v3 = vpop.eup %1166  ;;  %v797_v4 = vmul.f32 1.442695, %v782_v28 }
 0x336   :  { %1137 = vmatmul.msk.f32.gmra.mxu3 %vm750_vm13, %v1167_v3  ;;  %v817_v31 = vsel %vm750_vm13, %v1167_v3, 0.0 }
 0x337   :  { %1168 = vpow2.f32 %v797_v4  ;;  %818 = vadd.xlane.f32.xlu2 %v817_v31 }
 0x33d   :  { %v1169_v32 = vpop.eup %1168 }
 0x33e   :  { %1138 = vmatmul.msk.f32.gmra.mxu3 %vm750_vm13, %v1169_v32  ;;  %v820_v5 = vsel %vm750_vm13, %v1169_v32, 0.0 }
 0x33f   :  { %821 = vadd.xlane.f32.xlu0 %v820_v5 }
 0x37a   :  { %v801_v42 = vpop.xlane.xlu2 %800 }
 0x37b   :  { %1170 = vrcp.f32 %v801_v42 }
 0x381   :  { %v1171_v6 = vpop.eup %1170 }
 0x382   :  { %v896_v44 = vmul.f32 %v1171_v6, %v801_v42  ;;  %v804_v46 = vpop.xlane.xlu0 %803 }
 0x383   :  { %1172 = vrcp.f32 %v804_v46 }
 0x384   :  { %v904_v8 = vsub.f32 2.0, %v896_v44 }
 0x386   :  { %v912_v50 = vmul.f32 %v1171_v6, %v904_v8 }
 0x389   :  { %v1173_v54 = vpop.eup %1172  ;;  %v864_v9 = vpop.f32.mrf.mxu3 }
 0x38a   :  { %v897_v56 = vmul.f32 %v1173_v54, %v804_v46  ;;  %v920_v57 = vmul.f32 %v912_v50, %v864_v9  ;;  %v807_v10 = vpop.xlane.xlu1 %806 }
 0x38b   :  { %1174 = vrcp.f32 %v807_v10 }
 0x38c   :  { %v905_v11 = vsub.f32 2.0, %v897_v56  ;;  %1140 = vmatmul.msk.f32.vlgmr.msrb.gmra.mxu0 %vm627_vm2, %v920_v57 }
 0x38e   :  { %v913_v12 = vmul.f32 %v1173_v54, %v905_v11 }
 0x391   :  { %v1175_v14 = vpop.eup %1174  ;;  %v867_v7 = vpop.f32.mrf.mxu3 }
 0x392   :  { %v898_v15 = vmul.f32 %v1175_v14, %v807_v10  ;;  %v921_v16 = vmul.f32 %v913_v12, %v867_v7  ;;  %v810_v63 = vpop.xlane.xlu2 %809  ;;  %v1020_v7 = vshra.s32 %v1244_v19, 5 }
 0x393   :  { %1176 = vrcp.f32 %v810_v63 }
 0x394   :  { %v906_v58 = vsub.f32 2.0, %v898_v15  ;;  %1141 = vmatmul.msk.f32.gmra.mxu0 %vm627_vm2, %v921_v16  ;;  %v1010_v15 = vsel %vm1002_vm10, 1.0, %v1186_v36  ;;  %v1021_v1 = vshll.u32 %v1020_v7, 3 }
 0x396   :  { %v914_v20 = vmul.f32 %v1175_v14, %v906_v58  ;;  %v1011_v14 = vsel %vm1003_vm9, 1.0, %v1186_v36  ;;  %v1009_v58 = vsel %vm1001_vm11, 1.0, %v1186_v36  ;;  %v1022_v40 = vor.u32 %v1021_v1, %v928_v38  ;;  %v25_v38 = vld [vmem:[%s1597_s1 + $0x60] sm:$0xff] }
 0x398   :  { %vm1023_vm3 = vcmp.eq.s32.totalorder %v1022_v40, %v1237_v13  ;;  %vm1024_vm4 = vcmp.eq.s32.totalorder %v1022_v40, %v1242_v18  ;;  %v26_v13 = vld [vmem:[%s1597_s1 + $0x68] sm:$0xff] }
 0x399   :  { %v1177_v21 = vpop.eup %1176  ;;  %v870_v22 = vpop.f32.mrf.mxu3  ;;  %v1025_v19 = vsel %vm1023_vm3, 1.0, %v1186_v36 }
 0x39a   :  { %v899_v23 = vmul.f32 %v1177_v21, %v810_v63  ;;  %v922_v25 = vmul.f32 %v914_v20, %v870_v22  ;;  %v813_v27 = vpop.xlane.xlu0 %812  ;;  %v1006_v22 = vsel %vm998_vm14, 1.0, %v1186_v36 }
 0x39b   :  { %1178 = vrcp.f32 %v813_v27 }
 0x39c   :  { %v907_v29 = vsub.f32 2.0, %v899_v23  ;;  %1142 = vmatmul.msk.f32.gmra.mxu0 %vm627_vm2, %v922_v25 }
 0x39e   :  { %v915_v30 = vmul.f32 %v1177_v21, %v907_v29  ;;  %v1007_v21 = vsel %vm999_vm12, 1.0, %v1186_v36 }
 0x3a1   :  { %v1179_v33 = vpop.eup %1178  ;;  %v873_v35 = vpop.f32.mrf.mxu3 }
 0x3a2   :  { %v900_v37 = vmul.f32 %v1179_v33, %v813_v27  ;;  %v923_v39 = vmul.f32 %v915_v30, %v873_v35  ;;  %v816_v41 = vpop.xlane.xlu1 %815  ;;  %v1004_v27 = vsel %vm996_vm1, 1.0, %v1186_v36  ;;  %v1026_v30 = vsel %vm1024_vm4, 1.0, %v1186_v36 }
 0x3a3   :  { %1180 = vrcp.f32 %v816_v41 }
 0x3a4   :  { %v908_v43 = vsub.f32 2.0, %v900_v37  ;;  %1143 = vmatmul.msk.f32.gmra.mxu0 %vm627_vm2, %v923_v39 }
 0x3a6   :  { %v916_v45 = vmul.f32 %v1179_v33, %v908_v43 }
 0x3a9   :  { %v1181_v48 = vpop.eup %1180  ;;  %v876_v49 = vpop.f32.mrf.mxu3 }
 0x3aa   :  { %v901_v53 = vmul.f32 %v1181_v48, %v816_v41  ;;  %v924_v55 = vmul.f32 %v916_v45, %v876_v49  ;;  %v819_v59 = vpop.xlane.xlu2 %818 }
 0x3ab   :  { %1182 = vrcp.f32 %v819_v59 }
 0x3ac   :  { %v909_v61 = vsub.f32 2.0, %v901_v53  ;;  %1144 = vmatmul.msk.f32.gmra.mxu0 %vm627_vm2, %v924_v55 }
 0x3ae   :  { %v917_v24 = vmul.f32 %v1181_v48, %v909_v61 }
 0x3b1   :  { %v1183_v62 = vpop.eup %1182  ;;  %v879_v0 = vpop.f32.mrf.mxu3 }
 0x3b2   :  { %v902_v2 = vmul.f32 %v1183_v62, %v819_v59  ;;  %v925_v28 = vmul.f32 %v917_v24, %v879_v0  ;;  %v822_v3 = vpop.xlane.xlu0 %821 }
 0x3b3   :  { %1184 = vrcp.f32 %v822_v3 }
 0x3b4   :  { %v910_v4 = vsub.f32 2.0, %v902_v2  ;;  %1145 = vmatmul.msk.f32.gmra.mxu0 %vm627_vm2, %v925_v28 }
 0x3b6   :  { %v918_v31 = vmul.f32 %v1183_v62, %v910_v4 }
 0x3b9   :  { %v1185_v32 = vpop.eup %1184  ;;  %v882_v5 = vpop.f32.mrf.mxu3 }
 0x3ba   :  { %v903_v42 = vmul.f32 %v1185_v32, %v822_v3  ;;  %v926_v6 = vmul.f32 %v918_v31, %v882_v5 }
 0x3bc   :  { %v911_v44 = vsub.f32 2.0, %v903_v42  ;;  %1146 = vmatmul.msk.f32.gmra.mxu0 %vm627_vm2, %v926_v6 }
 0x3be   :  { %v919_v46 = vmul.f32 %v1185_v32, %v911_v44 }
 0x3c1   :  { %v885_v8 = vpop.f32.mrf.mxu3 }
 0x3c2   :  { %v927_v50 = vmul.f32 %v919_v46, %v885_v8 }
 0x3c4   :  { %1147 = vmatmul.msk.f32.gmra.mxu0 %vm627_vm2, %v927_v50  ;;  %vm1000_vm2 = vcmp.eq.s32.totalorder %v1465_v51, %v1410_v47  ;;  %v27_v51 = vld [vmem:[%s1597_s1 + $0x70] sm:$0xff] }
 0x3c5   :  { %v1008_v20 = vsel %vm1000_vm2, 1.0, %v1186_v36 }
 0x409   :  { %v972_v54 = vpop.f32.mrf.mxu0 }
 0x40a   :  { %v1012_v29 = vmul.f32 %v1004_v27, %v972_v54 }
 0x411   :  { %v975_v9 = vpop.f32.mrf.mxu0 }
 0x412   :  { %v1013_v17 = vmul.f32 %v1005_v34, %v975_v9 }
 0x419   :  { %v978_v56 = vpop.f32.mrf.mxu0 }
 0x41a   :  { %v1014_v25 = vmul.f32 %v1006_v22, %v978_v56 }
 0x421   :  { %v981_v57 = vpop.f32.mrf.mxu0 }
 0x422   :  { %v1015_v23 = vmul.f32 %v1007_v21, %v981_v57 }
 0x429   :  { %v984_v10 = vpop.f32.mrf.mxu0 }
 0x42a   :  { %v1016_v47 = vmul.f32 %v1008_v20, %v984_v10 }
 0x431   :  { %v987_v11 = vpop.f32.mrf.mxu0 }
 0x432   :  { %v1017_v52 = vmul.f32 %v1009_v58, %v987_v11 }
 0x439   :  { %v990_v12 = vpop.f32.mrf.mxu0 }
 0x43a   :  { %v1018_v60 = vmul.f32 %v1010_v15, %v990_v12 }
 0x441   :  { %v993_v16 = vpop.f32.mrf.mxu0 }
 0x442   :  { %v1019_v63 = vmul.f32 %v1011_v14, %v993_v16 }
 0x444   :  { %1041 = vmatpush.msrb.mxu1 %v1019_v63 }
 0x446   :  { %1042 = vmatpush.msrb.mxu1 %v1018_v60 }
 0x448   :  { %1043 = vmatpush.msrb.mxu1 %v1017_v52 }
 0x44a   :  { %1044 = vmatpush.msrb.mxu1 %v1016_v47 }
 0x44c   :  { %1045 = vmatpush.msrb.mxu1 %v1015_v23 }
 0x44e   :  { %1046 = vmatpush.msrb.mxu1 %v1014_v25 }
 0x450   :  { %1047 = vmatpush.msrb.mxu1 %v1013_v17 }
 0x452   :  { %1048 = vmatpush.msrb.mxu1 %v1012_v29 }
 0x453   :  { %1148 = vmatmul.msk.f32.vlgmr.msrb.gmra.mxu1 %vm750_vm13, %v1025_v19 }
 0x454   :  { %1074 = vmatpush.msra.mxu1 %v28_v26 }
 0x456   :  { %1075 = vmatpush.msra.mxu1 %v27_v51 }
 0x458   :  { %1076 = vmatpush.msra.mxu1 %v26_v13 }
 0x45a   :  { %1077 = vmatpush.msra.mxu1 %v25_v38 }
 0x45b   :  { %1149 = vmatmul.msk.f32.gmra.mxu1 %vm750_vm13, %v1026_v30 }
 0x4d0   :  { %v1050_v33 = vpop.f32.mrf.mxu1 }
 0x4d1   :  { %1150 = vmatmul.msk.f32.vlgmr.msra.gmra.mxu1 %vm29_vm0, %v1050_v33 }
 0x4d8   :  { %v1053_v35 = vpop.f32.mrf.mxu1 }
 0x4d9   :  { %1151 = vmatmul.msk.f32.gmra.mxu1 %vm29_vm0, %v1053_v35 }
 0x54e   :  { %v1079_v18 = vpop.f32.mrf.mxu1 }
 0x54f   :  { %1085 = vst [vmem:[%s1599_s2] sm:$0xff] %v1079_v18 }
 0x556   :  { %v1082_v37 = vpop.f32.mrf.mxu1 }
 0x557   :  { %1086 = vst [vmem:[%s1599_s2 + $0x8] sm:$0xff] %v1082_v37 }

</bundles_post_ra>
